<compile_context>
chip_gen: v7x
topology: tpu7x:2x2x1
jax: 0.10.0
libtpu: 0.0.40
codegen_flags: <defaults>
</compile_context>

<pallas_src>
import math
from functools import partial

import jax
import jax.numpy as jnp
import numpy as np
from jax.experimental import pallas as pl
from jax.experimental.pallas import tpu as pltpu

# ----------------------------- config ---------------------------------------
D_MODEL = 32
N_HEADS = 4
DIM_FF = 64
SEQ = 8
BATCH = 2
HEAD_DIM = D_MODEL // N_HEADS
LN_EPS = 1e-5

assert DIM_FF == 2 * D_MODEL, "weight-slab packing below assumes dim_ff == 2*d_model"


# ----------------------------- kernel ---------------------------------------
def encoder_kernel(
    x_ref, pos_ref, wa_ref, wb_ref, vec_ref, out_ref,
    *, batch, seq, d_model, dim_ff, n_heads, head_dim,
):
    # x_ref / pos_ref / out_ref : (batch*seq, d_model) f32
    # wa_ref : (2*d_model, 2*d_model) bf16  rows [0:D]   = [Wq | Wk] fused
    #                                       rows [D:2D]  = W1 (FFN in)
    # wb_ref : (2*d_model + dim_ff, d_model) bf16  rows [0:D]=Wv, [D:2D]=Wo, [2D:2D+FF]=W2
    # vec_ref: (9, max(2D, FF)) f32  bias / LayerNorm slab (see pack_params)
    f32, bf16 = jnp.float32, jnp.bfloat16
    rows = batch * seq

    x = x_ref[...]
    pos = pos_ref[...]

    # --- fused Q/K projection (input = x + pos) and V projection (input = x) ---
    qk_in = (x + pos).astype(bf16)
    qk = jnp.dot(qk_in, wa_ref[0:d_model, :],
                 preferred_element_type=f32) + vec_ref[0:1, :]                # (rows, 2D)
    v = jnp.dot(x.astype(bf16), wb_ref[0:d_model, :],
                preferred_element_type=f32) + vec_ref[2:3, :d_model]          # (rows, D)

    qk3 = qk.reshape(batch, seq, 2 * d_model).astype(bf16)
    v3 = v.reshape(batch, seq, d_model).astype(bf16)

    # --- multi-head attention, batched over B with 3-D einsums ---
    scale = 1.0 / math.sqrt(head_dim)
    head_outs = []
    for h in range(n_heads):  # static unroll; heads live in the lane dim
        q_h = qk3[:, :, h * head_dim:(h + 1) * head_dim]                       # (B,S,hd)
        k_h = qk3[:, :, d_model + h * head_dim:d_model + (h + 1) * head_dim]   # (B,S,hd)
        v_h = v3[:, :, h * head_dim:(h + 1) * head_dim]                        # (B,S,hd)
        s = jnp.einsum("bqd,bkd->bqk", q_h, k_h,
                       preferred_element_type=f32) * scale                     # (B,S,S) f32
        s = s - jnp.max(s, axis=-1, keepdims=True)
        p = jnp.exp(s)
        denom = jnp.sum(p, axis=-1, keepdims=True)
        p = (p * pl.reciprocal(denom, approx=True)).astype(bf16)
        head_outs.append(jnp.einsum("bqk,bkd->bqd", p, v_h,
                                    preferred_element_type=f32))               # (B,S,hd) f32
    attn = jnp.concatenate(head_outs, axis=-1).reshape(rows, d_model)          # (rows, D)
    attn = jnp.dot(attn.astype(bf16), wb_ref[d_model:2 * d_model, :],
                   preferred_element_type=f32) + vec_ref[3:4, :d_model]

    # --- residual + LayerNorm (f32 math, rsqrt on EUP, constant 1/D) ---
    inv_d = 1.0 / d_model

    def layer_norm(h, g, b):
        mu = jnp.sum(h, axis=-1, keepdims=True) * inv_d
        hc = h - mu
        var = jnp.sum(hc * hc, axis=-1, keepdims=True) * inv_d
        return hc * jax.lax.rsqrt(var + LN_EPS) * g + b

    h1 = layer_norm(x + attn, vec_ref[5:6, :d_model], vec_ref[6:7, :d_model])

    # --- feed-forward ---
    f = jnp.dot(h1.astype(bf16), wa_ref[d_model:2 * d_model, :],
                preferred_element_type=f32) + vec_ref[1:2, :dim_ff]            # (rows, FF)
    f = jnp.maximum(f, 0.0)
    f = jnp.dot(f.astype(bf16), wb_ref[2 * d_model:2 * d_model + dim_ff, :],
                preferred_element_type=f32) + vec_ref[4:5, :d_model]           # (rows, D)

    out_ref[...] = layer_norm(h1 + f, vec_ref[7:8, :d_model], vec_ref[8:9, :d_model])
    # TODO(synk): dropout layers are identity here (eval-mode semantics).


# ----------------------------- param packing ---------------------------------
def pack_params(p):
    """Pack 16 weight/bias tensors into 3 DMA slabs (2x bf16 weights, 1x f32 vecs)."""
    w_qk = jnp.concatenate([p["wq"], p["wk"]], axis=1)                        # (D, 2D)
    wa = jnp.concatenate([w_qk, p["w1"]], axis=0).astype(jnp.bfloat16)        # (2D, 2D)
    wb = jnp.concatenate([p["wv"], p["wo"], p["w2"]],
                         axis=0).astype(jnp.bfloat16)                         # (2D+FF, D)

    width = max(2 * D_MODEL, DIM_FF)

    def row(v):
        return jnp.pad(v, ((0, 0), (0, width - v.shape[1])))

    vec = jnp.concatenate([
        row(jnp.concatenate([p["bq"], p["bk"]], axis=1)),   # 0: [bq | bk]
        row(p["b1"]),                                       # 1: b1
        row(p["bv"]),                                       # 2: bv
        row(p["bo"]),                                       # 3: bo
        row(p["b2"]),                                       # 4: b2
        row(p["ln1_g"]),                                    # 5: ln1 gamma
        row(p["ln1_b"]),                                    # 6: ln1 beta
        row(p["ln2_g"]),                                    # 7: ln2 gamma
        row(p["ln2_b"]),                                    # 8: ln2 beta
    ], axis=0).astype(jnp.float32)                          # (9, width)
    return wa, wb, vec


# ----------------------------- wrapper ---------------------------------------
@jax.jit
def transformer_encoder(x, pos, params):
    """x, pos: [B, S, D] f32. Returns [B, S, D] f32."""
    B, S, D = x.shape
    wa, wb, vec = pack_params(params)
    x2 = x.reshape(B * S, D)
    pos2 = pos.reshape(B * S, D)

    kernel = partial(encoder_kernel, batch=B, seq=S, d_model=D, dim_ff=DIM_FF,
                     n_heads=N_HEADS, head_dim=HEAD_DIM)
    vmem = lambda: pl.BlockSpec(memory_space=pltpu.MemorySpace.VMEM)
    out = pl.pallas_call(
        kernel,
        out_shape=jax.ShapeDtypeStruct((B * S, D), jnp.float32),
        in_specs=[vmem() for _ in range(5)],
        out_specs=vmem(),
    )(x2, pos2, wa, wb, vec)
    return out.reshape(B, S, D)


# ----------------------------- params ---------------------------------------
def init_params(key):
    ks = jax.random.split(key, 8)
    scale = 0.1
    return {
        "wq": scale * jax.random.normal(ks[0], (D_MODEL, D_MODEL), jnp.float32),
        "bq": jnp.zeros((1, D_MODEL), jnp.float32),
        "wk": scale * jax.random.normal(ks[1], (D_MODEL, D_MODEL), jnp.float32),
        "bk": jnp.zeros((1, D_MODEL), jnp.float32),
        "wv": scale * jax.random.normal(ks[2], (D_MODEL, D_MODEL), jnp.float32),
        "bv": jnp.zeros((1, D_MODEL), jnp.float32),
        "wo": scale * jax.random.normal(ks[3], (D_MODEL, D_MODEL), jnp.float32),
        "bo": jnp.zeros((1, D_MODEL), jnp.float32),
        "ln1_g": jnp.ones((1, D_MODEL), jnp.float32),
        "ln1_b": jnp.zeros((1, D_MODEL), jnp.float32),
        "w1": scale * jax.random.normal(ks[4], (D_MODEL, DIM_FF), jnp.float32),
        "b1": jnp.zeros((1, DIM_FF), jnp.float32),
        "w2": scale * jax.random.normal(ks[5], (DIM_FF, D_MODEL), jnp.float32),
        "b2": jnp.zeros((1, D_MODEL), jnp.float32),
        "ln2_g": jnp.ones((1, D_MODEL), jnp.float32),
        "ln2_b": jnp.zeros((1, D_MODEL), jnp.float32),
    }


# ----------------------------- reference (pure JAX, f32) ----------------------
def reference(x, pos, p):
    def layer_norm(h, g, b):
        mu = jnp.mean(h, axis=-1, keepdims=True)
        var = jnp.mean((h - mu) ** 2, axis=-1, keepdims=True)
        return (h - mu) / jnp.sqrt(var + LN_EPS) * g + b

    qk_in = x + pos
    q = qk_in @ p["wq"] + p["bq"]
    k = qk_in @ p["wk"] + p["bk"]
    v = x @ p["wv"] + p["bv"]
    B, S, D = x.shape
    q = q.reshape(B, S, N_HEADS, HEAD_DIM).transpose(0, 2, 1, 3)
    k = k.reshape(B, S, N_HEADS, HEAD_DIM).transpose(0, 2, 1, 3)
    v = v.reshape(B, S, N_HEADS, HEAD_DIM).transpose(0, 2, 1, 3)
    s = jnp.einsum("bhqd,bhkd->bhqk", q, k) / math.sqrt(HEAD_DIM)
    a = jax.nn.softmax(s, axis=-1)
    o = jnp.einsum("bhqk,bhkd->bhqd", a, v).transpose(0, 2, 1, 3).reshape(B, S, D)
    o = o @ p["wo"] + p["bo"]
    h1 = layer_norm(x + o, p["ln1_g"], p["ln1_b"])
    f = jnp.maximum(h1 @ p["w1"] + p["b1"], 0.0) @ p["w2"] + p["b2"]
    return layer_norm(h1 + f, p["ln2_g"], p["ln2_b"])


# ----------------------------- main ------------------------------------------
if __name__ == "__main__":
    key = jax.random.PRNGKey(0)
    kx, kp, kpar = jax.random.split(key, 3)
    x = jax.random.normal(kx, (BATCH, SEQ, D_MODEL), jnp.float32)
    pos = jax.random.normal(kp, (BATCH, SEQ, D_MODEL), jnp.float32)
    params = init_params(kpar)

    out = jax.block_until_ready(transformer_encoder(x, pos, params))
    ref = reference(x, pos, params)

    assert out.shape == (BATCH, SEQ, D_MODEL)
    # Kernel feeds bf16 operands to the MXU (f32 accumulation); reference is pure f32,
    # so compare with bf16-appropriate tolerance.
    assert np.allclose(np.asarray(out), np.asarray(ref), rtol=5e-2, atol=5e-2)

    print("KERNEL_OK")
</pallas_src>

<mosaic_0001>
module attributes {stable_mosaic.version = 11 : i64} {
  func.func @encoder_kernel(%arg0: memref<16x32xf32, #tpu.memory_space<vmem>>, %arg1: memref<16x32xf32, #tpu.memory_space<vmem>>, %arg2: memref<64x64xbf16, #tpu.memory_space<vmem>>, %arg3: memref<128x32xbf16, #tpu.memory_space<vmem>>, %arg4: memref<9x64xf32, #tpu.memory_space<vmem>>, %arg5: memref<16x32xf32, #tpu.memory_space<vmem>>) attributes {dimension_semantics = [], scalar_prefetch = 0 : i64, scratch_operands = 0 : i64, tpu.core_type = #tpu.core_type<tc>} {
    %c0 = arith.constant 0 : index
    %c0_0 = arith.constant 0 : index
    %0 = vector.load %arg0[%c0, %c0_0] : memref<16x32xf32, #tpu.memory_space<vmem>>, vector<16x32xf32>
    %c0_1 = arith.constant 0 : index
    %c0_2 = arith.constant 0 : index
    %1 = vector.load %arg1[%c0_1, %c0_2] : memref<16x32xf32, #tpu.memory_space<vmem>>, vector<16x32xf32>
    %2 = arith.addf %0, %1 : vector<16x32xf32>
    %3 = arith.truncf %2 : vector<16x32xf32> to vector<16x32xbf16>
    %c0_3 = arith.constant 0 : index
    %c0_4 = arith.constant 0 : index
    %4 = vector.load %arg2[%c0_3, %c0_4] : memref<64x64xbf16, #tpu.memory_space<vmem>>, vector<32x64xbf16>
    %cst = arith.constant dense<0.000000e+00> : vector<16x64xf32>
    %5 = tpu.matmul %3, %4, %cst {dimension_numbers = #tpu.dot_dimension_numbers<[1], [0], [0], [1], [0, 0, 1, 1], [], []>} : vector<16x32xbf16>, vector<32x64xbf16>, vector<16x64xf32> -> vector<16x64xf32>
    %c0_5 = arith.constant 0 : index
    %c0_6 = arith.constant 0 : index
    %6 = vector.load %arg4[%c0_5, %c0_6] : memref<9x64xf32, #tpu.memory_space<vmem>>, vector<1x64xf32>
    %7 = vector.broadcast %6 : vector<1x64xf32> to vector<16x64xf32>
    %8 = arith.addf %5, %7 : vector<16x64xf32>
    %9 = arith.truncf %0 : vector<16x32xf32> to vector<16x32xbf16>
    %c0_7 = arith.constant 0 : index
    %c0_8 = arith.constant 0 : index
    %10 = vector.load %arg3[%c0_7, %c0_8] : memref<128x32xbf16, #tpu.memory_space<vmem>>, vector<32x32xbf16>
    %cst_9 = arith.constant dense<0.000000e+00> : vector<16x32xf32>
    %11 = tpu.matmul %9, %10, %cst_9 {dimension_numbers = #tpu.dot_dimension_numbers<[1], [0], [0], [1], [0, 0, 1, 1], [], []>} : vector<16x32xbf16>, vector<32x32xbf16>, vector<16x32xf32> -> vector<16x32xf32>
    %c2 = arith.constant 2 : index
    %c0_10 = arith.constant 0 : index
    %12 = vector.load %arg4[%c2, %c0_10] : memref<9x64xf32, #tpu.memory_space<vmem>>, vector<1x32xf32>
    %13 = vector.broadcast %12 : vector<1x32xf32> to vector<16x32xf32>
    %14 = arith.addf %11, %13 : vector<16x32xf32>
    %15 = vector.shape_cast %8 : vector<16x64xf32> to vector<2x8x64xf32>
    %16 = arith.truncf %15 : vector<2x8x64xf32> to vector<2x8x64xbf16>
    %17 = vector.shape_cast %14 : vector<16x32xf32> to vector<2x8x32xf32>
    %18 = arith.truncf %17 : vector<2x8x32xf32> to vector<2x8x32xbf16>
    %19 = vector.extract_strided_slice %16 {offsets = [0, 0, 0], sizes = [2, 8, 8], strides = [1, 1, 1]} : vector<2x8x64xbf16> to vector<2x8x8xbf16>
    %20 = vector.extract_strided_slice %16 {offsets = [0, 0, 32], sizes = [2, 8, 8], strides = [1, 1, 1]} : vector<2x8x64xbf16> to vector<2x8x8xbf16>
    %21 = vector.extract_strided_slice %18 {offsets = [0, 0, 0], sizes = [2, 8, 8], strides = [1, 1, 1]} : vector<2x8x32xbf16> to vector<2x8x8xbf16>
    "tpu.trace_start"() <{level = 10 : i32, message = "bqd,bkd->bqk"}> : () -> ()
    %cst_11 = arith.constant dense<0.000000e+00> : vector<2x8x8xf32>
    %22 = tpu.matmul %19, %20, %cst_11 {dimension_numbers = #tpu.dot_dimension_numbers<[2], [2], [1], [1], [0, 0, 0, 1, 1, 1], [0], [0]>} : vector<2x8x8xbf16>, vector<2x8x8xbf16>, vector<2x8x8xf32> -> vector<2x8x8xf32>
    "tpu.trace_stop"() : () -> ()
    %cst_12 = arith.constant 0.353553385 : f32
    %23 = vector.broadcast %cst_12 : f32 to vector<2x8x8xf32>
    %24 = arith.mulf %22, %23 : vector<2x8x8xf32>
    %cst_13 = arith.constant dense<0xFF800000> : vector<2x8xf32>
    %25 = vector.multi_reduction <maximumf>, %24, %cst_13 [2] : vector<2x8x8xf32> to vector<2x8xf32>
    %26 = vector.shape_cast %25 : vector<2x8xf32> to vector<2x8x1xf32>
    %27 = vector.broadcast %26 : vector<2x8x1xf32> to vector<2x8x8xf32>
    %28 = arith.subf %24, %27 : vector<2x8x8xf32>
    %29 = math.exp %28 : vector<2x8x8xf32>
    %cst_14 = arith.constant dense<0.000000e+00> : vector<2x8xf32>
    %30 = vector.multi_reduction <add>, %29, %cst_14 [2] : vector<2x8x8xf32> to vector<2x8xf32>
    %31 = vector.shape_cast %30 : vector<2x8xf32> to vector<2x8x1xf32>
    %32 = tpu.reciprocal %31 {approx = true} : vector<2x8x1xf32> -> vector<2x8x1xf32>
    %33 = vector.broadcast %32 : vector<2x8x1xf32> to vector<2x8x8xf32>
    %34 = arith.mulf %29, %33 : vector<2x8x8xf32>
    %35 = arith.truncf %34 : vector<2x8x8xf32> to vector<2x8x8xbf16>
    "tpu.trace_start"() <{level = 10 : i32, message = "bqk,bkd->bqd"}> : () -> ()
    %cst_15 = arith.constant dense<0.000000e+00> : vector<2x8x8xf32>
    %36 = tpu.matmul %35, %21, %cst_15 {dimension_numbers = #tpu.dot_dimension_numbers<[2], [1], [1], [2], [0, 0, 0, 1, 1, 2], [0], [0]>} : vector<2x8x8xbf16>, vector<2x8x8xbf16>, vector<2x8x8xf32> -> vector<2x8x8xf32>
    "tpu.trace_stop"() : () -> ()
    %37 = vector.extract_strided_slice %16 {offsets = [0, 0, 8], sizes = [2, 8, 8], strides = [1, 1, 1]} : vector<2x8x64xbf16> to vector<2x8x8xbf16>
    %38 = vector.extract_strided_slice %16 {offsets = [0, 0, 40], sizes = [2, 8, 8], strides = [1, 1, 1]} : vector<2x8x64xbf16> to vector<2x8x8xbf16>
    %39 = vector.extract_strided_slice %18 {offsets = [0, 0, 8], sizes = [2, 8, 8], strides = [1, 1, 1]} : vector<2x8x32xbf16> to vector<2x8x8xbf16>
    "tpu.trace_start"() <{level = 10 : i32, message = "bqd,bkd->bqk"}> : () -> ()
    %cst_16 = arith.constant dense<0.000000e+00> : vector<2x8x8xf32>
    %40 = tpu.matmul %37, %38, %cst_16 {dimension_numbers = #tpu.dot_dimension_numbers<[2], [2], [1], [1], [0, 0, 0, 1, 1, 1], [0], [0]>} : vector<2x8x8xbf16>, vector<2x8x8xbf16>, vector<2x8x8xf32> -> vector<2x8x8xf32>
    "tpu.trace_stop"() : () -> ()
    %cst_17 = arith.constant 0.353553385 : f32
    %41 = vector.broadcast %cst_17 : f32 to vector<2x8x8xf32>
    %42 = arith.mulf %40, %41 : vector<2x8x8xf32>
    %cst_18 = arith.constant dense<0xFF800000> : vector<2x8xf32>
    %43 = vector.multi_reduction <maximumf>, %42, %cst_18 [2] : vector<2x8x8xf32> to vector<2x8xf32>
    %44 = vector.shape_cast %43 : vector<2x8xf32> to vector<2x8x1xf32>
    %45 = vector.broadcast %44 : vector<2x8x1xf32> to vector<2x8x8xf32>
    %46 = arith.subf %42, %45 : vector<2x8x8xf32>
    %47 = math.exp %46 : vector<2x8x8xf32>
    %cst_19 = arith.constant dense<0.000000e+00> : vector<2x8xf32>
    %48 = vector.multi_reduction <add>, %47, %cst_19 [2] : vector<2x8x8xf32> to vector<2x8xf32>
    %49 = vector.shape_cast %48 : vector<2x8xf32> to vector<2x8x1xf32>
    %50 = tpu.reciprocal %49 {approx = true} : vector<2x8x1xf32> -> vector<2x8x1xf32>
    %51 = vector.broadcast %50 : vector<2x8x1xf32> to vector<2x8x8xf32>
    %52 = arith.mulf %47, %51 : vector<2x8x8xf32>
    %53 = arith.truncf %52 : vector<2x8x8xf32> to vector<2x8x8xbf16>
    "tpu.trace_start"() <{level = 10 : i32, message = "bqk,bkd->bqd"}> : () -> ()
    %cst_20 = arith.constant dense<0.000000e+00> : vector<2x8x8xf32>
    %54 = tpu.matmul %53, %39, %cst_20 {dimension_numbers = #tpu.dot_dimension_numbers<[2], [1], [1], [2], [0, 0, 0, 1, 1, 2], [0], [0]>} : vector<2x8x8xbf16>, vector<2x8x8xbf16>, vector<2x8x8xf32> -> vector<2x8x8xf32>
    "tpu.trace_stop"() : () -> ()
    %55 = vector.extract_strided_slice %16 {offsets = [0, 0, 16], sizes = [2, 8, 8], strides = [1, 1, 1]} : vector<2x8x64xbf16> to vector<2x8x8xbf16>
    %56 = vector.extract_strided_slice %16 {offsets = [0, 0, 48], sizes = [2, 8, 8], strides = [1, 1, 1]} : vector<2x8x64xbf16> to vector<2x8x8xbf16>
    %57 = vector.extract_strided_slice %18 {offsets = [0, 0, 16], sizes = [2, 8, 8], strides = [1, 1, 1]} : vector<2x8x32xbf16> to vector<2x8x8xbf16>
    "tpu.trace_start"() <{level = 10 : i32, message = "bqd,bkd->bqk"}> : () -> ()
    %cst_21 = arith.constant dense<0.000000e+00> : vector<2x8x8xf32>
    %58 = tpu.matmul %55, %56, %cst_21 {dimension_numbers = #tpu.dot_dimension_numbers<[2], [2], [1], [1], [0, 0, 0, 1, 1, 1], [0], [0]>} : vector<2x8x8xbf16>, vector<2x8x8xbf16>, vector<2x8x8xf32> -> vector<2x8x8xf32>
    "tpu.trace_stop"() : () -> ()
    %cst_22 = arith.constant 0.353553385 : f32
    %59 = vector.broadcast %cst_22 : f32 to vector<2x8x8xf32>
    %60 = arith.mulf %58, %59 : vector<2x8x8xf32>
    %cst_23 = arith.constant dense<0xFF800000> : vector<2x8xf32>
    %61 = vector.multi_reduction <maximumf>, %60, %cst_23 [2] : vector<2x8x8xf32> to vector<2x8xf32>
    %62 = vector.shape_cast %61 : vector<2x8xf32> to vector<2x8x1xf32>
    %63 = vector.broadcast %62 : vector<2x8x1xf32> to vector<2x8x8xf32>
    %64 = arith.subf %60, %63 : vector<2x8x8xf32>
    %65 = math.exp %64 : vector<2x8x8xf32>
    %cst_24 = arith.constant dense<0.000000e+00> : vector<2x8xf32>
    %66 = vector.multi_reduction <add>, %65, %cst_24 [2] : vector<2x8x8xf32> to vector<2x8xf32>
    %67 = vector.shape_cast %66 : vector<2x8xf32> to vector<2x8x1xf32>
    %68 = tpu.reciprocal %67 {approx = true} : vector<2x8x1xf32> -> vector<2x8x1xf32>
    %69 = vector.broadcast %68 : vector<2x8x1xf32> to vector<2x8x8xf32>
    %70 = arith.mulf %65, %69 : vector<2x8x8xf32>
    %71 = arith.truncf %70 : vector<2x8x8xf32> to vector<2x8x8xbf16>
    "tpu.trace_start"() <{level = 10 : i32, message = "bqk,bkd->bqd"}> : () -> ()
    %cst_25 = arith.constant dense<0.000000e+00> : vector<2x8x8xf32>
    %72 = tpu.matmul %71, %57, %cst_25 {dimension_numbers = #tpu.dot_dimension_numbers<[2], [1], [1], [2], [0, 0, 0, 1, 1, 2], [0], [0]>} : vector<2x8x8xbf16>, vector<2x8x8xbf16>, vector<2x8x8xf32> -> vector<2x8x8xf32>
    "tpu.trace_stop"() : () -> ()
    %73 = vector.extract_strided_slice %16 {offsets = [0, 0, 24], sizes = [2, 8, 8], strides = [1, 1, 1]} : vector<2x8x64xbf16> to vector<2x8x8xbf16>
    %74 = vector.extract_strided_slice %16 {offsets = [0, 0, 56], sizes = [2, 8, 8], strides = [1, 1, 1]} : vector<2x8x64xbf16> to vector<2x8x8xbf16>
    %75 = vector.extract_strided_slice %18 {offsets = [0, 0, 24], sizes = [2, 8, 8], strides = [1, 1, 1]} : vector<2x8x32xbf16> to vector<2x8x8xbf16>
    "tpu.trace_start"() <{level = 10 : i32, message = "bqd,bkd->bqk"}> : () -> ()
    %cst_26 = arith.constant dense<0.000000e+00> : vector<2x8x8xf32>
    %76 = tpu.matmul %73, %74, %cst_26 {dimension_numbers = #tpu.dot_dimension_numbers<[2], [2], [1], [1], [0, 0, 0, 1, 1, 1], [0], [0]>} : vector<2x8x8xbf16>, vector<2x8x8xbf16>, vector<2x8x8xf32> -> vector<2x8x8xf32>
    "tpu.trace_stop"() : () -> ()
    %cst_27 = arith.constant 0.353553385 : f32
    %77 = vector.broadcast %cst_27 : f32 to vector<2x8x8xf32>
    %78 = arith.mulf %76, %77 : vector<2x8x8xf32>
    %cst_28 = arith.constant dense<0xFF800000> : vector<2x8xf32>
    %79 = vector.multi_reduction <maximumf>, %78, %cst_28 [2] : vector<2x8x8xf32> to vector<2x8xf32>
    %80 = vector.shape_cast %79 : vector<2x8xf32> to vector<2x8x1xf32>
    %81 = vector.broadcast %80 : vector<2x8x1xf32> to vector<2x8x8xf32>
    %82 = arith.subf %78, %81 : vector<2x8x8xf32>
    %83 = math.exp %82 : vector<2x8x8xf32>
    %cst_29 = arith.constant dense<0.000000e+00> : vector<2x8xf32>
    %84 = vector.multi_reduction <add>, %83, %cst_29 [2] : vector<2x8x8xf32> to vector<2x8xf32>
    %85 = vector.shape_cast %84 : vector<2x8xf32> to vector<2x8x1xf32>
    %86 = tpu.reciprocal %85 {approx = true} : vector<2x8x1xf32> -> vector<2x8x1xf32>
    %87 = vector.broadcast %86 : vector<2x8x1xf32> to vector<2x8x8xf32>
    %88 = arith.mulf %83, %87 : vector<2x8x8xf32>
    %89 = arith.truncf %88 : vector<2x8x8xf32> to vector<2x8x8xbf16>
    "tpu.trace_start"() <{level = 10 : i32, message = "bqk,bkd->bqd"}> : () -> ()
    %cst_30 = arith.constant dense<0.000000e+00> : vector<2x8x8xf32>
    %90 = tpu.matmul %89, %75, %cst_30 {dimension_numbers = #tpu.dot_dimension_numbers<[2], [1], [1], [2], [0, 0, 0, 1, 1, 2], [0], [0]>} : vector<2x8x8xbf16>, vector<2x8x8xbf16>, vector<2x8x8xf32> -> vector<2x8x8xf32>
    "tpu.trace_stop"() : () -> ()
    %91 = tpu.concatenate %36, %54, %72, %90 in 2 : vector<2x8x8xf32>, vector<2x8x8xf32>, vector<2x8x8xf32>, vector<2x8x8xf32> -> vector<2x8x32xf32>
    %92 = vector.shape_cast %91 : vector<2x8x32xf32> to vector<16x32xf32>
    %93 = arith.truncf %92 : vector<16x32xf32> to vector<16x32xbf16>
    %c32 = arith.constant 32 : index
    %c0_31 = arith.constant 0 : index
    %94 = vector.load %arg3[%c32, %c0_31] : memref<128x32xbf16, #tpu.memory_space<vmem>>, vector<32x32xbf16>
    %cst_32 = arith.constant dense<0.000000e+00> : vector<16x32xf32>
    %95 = tpu.matmul %93, %94, %cst_32 {dimension_numbers = #tpu.dot_dimension_numbers<[1], [0], [0], [1], [0, 0, 1, 1], [], []>} : vector<16x32xbf16>, vector<32x32xbf16>, vector<16x32xf32> -> vector<16x32xf32>
    %c3 = arith.constant 3 : index
    %c0_33 = arith.constant 0 : index
    %96 = vector.load %arg4[%c3, %c0_33] : memref<9x64xf32, #tpu.memory_space<vmem>>, vector<1x32xf32>
    %97 = vector.broadcast %96 : vector<1x32xf32> to vector<16x32xf32>
    %98 = arith.addf %95, %97 : vector<16x32xf32>
    %99 = arith.addf %0, %98 : vector<16x32xf32>
    %c5 = arith.constant 5 : index
    %c0_34 = arith.constant 0 : index
    %100 = vector.load %arg4[%c5, %c0_34] : memref<9x64xf32, #tpu.memory_space<vmem>>, vector<1x32xf32>
    %c6 = arith.constant 6 : index
    %c0_35 = arith.constant 0 : index
    %101 = vector.load %arg4[%c6, %c0_35] : memref<9x64xf32, #tpu.memory_space<vmem>>, vector<1x32xf32>
    %cst_36 = arith.constant dense<0.000000e+00> : vector<16xf32>
    %102 = vector.multi_reduction <add>, %99, %cst_36 [1] : vector<16x32xf32> to vector<16xf32>
    %103 = vector.shape_cast %102 : vector<16xf32> to vector<16x1xf32>
    %cst_37 = arith.constant 3.125000e-02 : f32
    %104 = vector.broadcast %cst_37 : f32 to vector<16x1xf32>
    %105 = arith.mulf %103, %104 : vector<16x1xf32>
    %106 = vector.broadcast %105 : vector<16x1xf32> to vector<16x32xf32>
    %107 = arith.subf %99, %106 : vector<16x32xf32>
    %108 = arith.mulf %107, %107 : vector<16x32xf32>
    %cst_38 = arith.constant dense<0.000000e+00> : vector<16xf32>
    %109 = vector.multi_reduction <add>, %108, %cst_38 [1] : vector<16x32xf32> to vector<16xf32>
    %110 = vector.shape_cast %109 : vector<16xf32> to vector<16x1xf32>
    %cst_39 = arith.constant 3.125000e-02 : f32
    %111 = vector.broadcast %cst_39 : f32 to vector<16x1xf32>
    %112 = arith.mulf %110, %111 : vector<16x1xf32>
    %cst_40 = arith.constant 9.99999974E-6 : f32
    %113 = vector.broadcast %cst_40 : f32 to vector<16x1xf32>
    %114 = arith.addf %112, %113 : vector<16x1xf32>
    %115 = math.rsqrt %114 : vector<16x1xf32>
    %116 = vector.broadcast %115 : vector<16x1xf32> to vector<16x32xf32>
    %117 = arith.mulf %107, %116 : vector<16x32xf32>
    %118 = vector.broadcast %100 : vector<1x32xf32> to vector<16x32xf32>
    %119 = arith.mulf %117, %118 : vector<16x32xf32>
    %120 = vector.broadcast %101 : vector<1x32xf32> to vector<16x32xf32>
    %121 = arith.addf %119, %120 : vector<16x32xf32>
    %122 = arith.truncf %121 : vector<16x32xf32> to vector<16x32xbf16>
    %c32_41 = arith.constant 32 : index
    %c0_42 = arith.constant 0 : index
    %123 = vector.load %arg2[%c32_41, %c0_42] : memref<64x64xbf16, #tpu.memory_space<vmem>>, vector<32x64xbf16>
    %cst_43 = arith.constant dense<0.000000e+00> : vector<16x64xf32>
    %124 = tpu.matmul %122, %123, %cst_43 {dimension_numbers = #tpu.dot_dimension_numbers<[1], [0], [0], [1], [0, 0, 1, 1], [], []>} : vector<16x32xbf16>, vector<32x64xbf16>, vector<16x64xf32> -> vector<16x64xf32>
    %c1 = arith.constant 1 : index
    %c0_44 = arith.constant 0 : index
    %125 = vector.load %arg4[%c1, %c0_44] : memref<9x64xf32, #tpu.memory_space<vmem>>, vector<1x64xf32>
    %126 = vector.broadcast %125 : vector<1x64xf32> to vector<16x64xf32>
    %127 = arith.addf %124, %126 : vector<16x64xf32>
    %cst_45 = arith.constant 0.000000e+00 : f32
    %128 = vector.broadcast %cst_45 : f32 to vector<16x64xf32>
    %129 = arith.maximumf %127, %128 : vector<16x64xf32>
    %130 = arith.truncf %129 : vector<16x64xf32> to vector<16x64xbf16>
    %c64 = arith.constant 64 : index
    %c0_46 = arith.constant 0 : index
    %131 = vector.load %arg3[%c64, %c0_46] : memref<128x32xbf16, #tpu.memory_space<vmem>>, vector<64x32xbf16>
    %cst_47 = arith.constant dense<0.000000e+00> : vector<16x32xf32>
    %132 = tpu.matmul %130, %131, %cst_47 {dimension_numbers = #tpu.dot_dimension_numbers<[1], [0], [0], [1], [0, 0, 1, 1], [], []>} : vector<16x64xbf16>, vector<64x32xbf16>, vector<16x32xf32> -> vector<16x32xf32>
    %c4 = arith.constant 4 : index
    %c0_48 = arith.constant 0 : index
    %133 = vector.load %arg4[%c4, %c0_48] : memref<9x64xf32, #tpu.memory_space<vmem>>, vector<1x32xf32>
    %134 = vector.broadcast %133 : vector<1x32xf32> to vector<16x32xf32>
    %135 = arith.addf %132, %134 : vector<16x32xf32>
    %136 = arith.addf %121, %135 : vector<16x32xf32>
    %c7 = arith.constant 7 : index
    %c0_49 = arith.constant 0 : index
    %137 = vector.load %arg4[%c7, %c0_49] : memref<9x64xf32, #tpu.memory_space<vmem>>, vector<1x32xf32>
    %c8 = arith.constant 8 : index
    %c0_50 = arith.constant 0 : index
    %138 = vector.load %arg4[%c8, %c0_50] : memref<9x64xf32, #tpu.memory_space<vmem>>, vector<1x32xf32>
    %cst_51 = arith.constant dense<0.000000e+00> : vector<16xf32>
    %139 = vector.multi_reduction <add>, %136, %cst_51 [1] : vector<16x32xf32> to vector<16xf32>
    %140 = vector.shape_cast %139 : vector<16xf32> to vector<16x1xf32>
    %cst_52 = arith.constant 3.125000e-02 : f32
    %141 = vector.broadcast %cst_52 : f32 to vector<16x1xf32>
    %142 = arith.mulf %140, %141 : vector<16x1xf32>
    %143 = vector.broadcast %142 : vector<16x1xf32> to vector<16x32xf32>
    %144 = arith.subf %136, %143 : vector<16x32xf32>
    %145 = arith.mulf %144, %144 : vector<16x32xf32>
    %cst_53 = arith.constant dense<0.000000e+00> : vector<16xf32>
    %146 = vector.multi_reduction <add>, %145, %cst_53 [1] : vector<16x32xf32> to vector<16xf32>
    %147 = vector.shape_cast %146 : vector<16xf32> to vector<16x1xf32>
    %cst_54 = arith.constant 3.125000e-02 : f32
    %148 = vector.broadcast %cst_54 : f32 to vector<16x1xf32>
    %149 = arith.mulf %147, %148 : vector<16x1xf32>
    %cst_55 = arith.constant 9.99999974E-6 : f32
    %150 = vector.broadcast %cst_55 : f32 to vector<16x1xf32>
    %151 = arith.addf %149, %150 : vector<16x1xf32>
    %152 = math.rsqrt %151 : vector<16x1xf32>
    %153 = vector.broadcast %152 : vector<16x1xf32> to vector<16x32xf32>
    %154 = arith.mulf %144, %153 : vector<16x32xf32>
    %155 = vector.broadcast %137 : vector<1x32xf32> to vector<16x32xf32>
    %156 = arith.mulf %154, %155 : vector<16x32xf32>
    %157 = vector.broadcast %138 : vector<1x32xf32> to vector<16x32xf32>
    %158 = arith.addf %156, %157 : vector<16x32xf32>
    %c0_56 = arith.constant 0 : index
    %c0_57 = arith.constant 0 : index
    %159 = vector.load %arg5[%c0_56, %c0_57] : memref<16x32xf32, #tpu.memory_space<vmem>>, vector<16x32xf32>
    tpu.vector_store %arg5[%c0_56, %c0_57], %158 {strides = array<i32>} : memref<16x32xf32, #tpu.memory_space<vmem>>, vector<16x32xf32>,
    return
  }
}

</mosaic_0001>

<bundles_post_ra>
// kernel: transformer_encoder.1
= control target key start
LH: loop header
LB: loop body
LE: loop exit
PB: predicated region body
PF: predicated region fallthrough
CT: control target
= control target key end

     0   :  { %v1738_v1 = vmov 0.0   ;;  %vm1739_vm0 = vmmov 0   ;;  %vm50_vm1 = vcmask 261120   ;;  %s2074_s0 = inlined_call_operand.vmem [shape: f32[16,32], index: 0, kind: input, shape index: {}]   ;;  %s2075_s1 = inlined_call_operand.vmem [shape: f32[16,32], index: 1, kind: input, shape index: {}]   ;;  %s2076_s2 = inlined_call_operand.vmem [shape: bf16[64,64], index: 2, kind: input, shape index: {}]   ;;  %s2077_s3 = inlined_call_operand.vmem [shape: bf16[128,32], index: 3, kind: input, shape index: {}]   ;;  %s2078_s4 = inlined_call_operand.vmem [shape: f32[9,64], index: 4, kind: input, shape index: {}]   ;;  %s2079_s5 = inlined_call_operand.hbm [shape: f32[16,32], index: 5, kind: output, shape index: {}]  }
   0x1   :  { %v1662_v0 = vld [vmem:[%s2076_s2] sm:$0xff]   ;;  %1493 = vmatprep.subr.bf16.mxu1 %v1738_v1  ;;  %v1663_v2 = vld [vmem:[%s2076_s2 + $0x8] sm:$0xff]   ;;  %1509 = vmatprep.subr.bf16.mxu0 %v1738_v1 }
   0x2   :  { %1494 = vmatpush3.bf16.msra.mxu1 %v1662_v0  ;;  %1497 = vmatprep.mubr.msk.bf16.mxu1 %vm1739_vm0, %v1738_v1  ;;  %v1795_v3 = vld [vmem:[%s2074_s0] sm:$0xff]  ;;  %v1800_v4 = vld [vmem:[%s2074_s0 + $0x8] sm:$0xff] }
   0x3   :  { %v24_v5 = vld [vmem:[%s2075_s1] sm:$0xff]  ;;  %1495 = vmatprep.subr.bf16.mxu1 %v1738_v1  ;;  %v25_v6 = vld [vmem:[%s2075_s1 + $0x8] sm:$0xff]  ;;  %1511 = vmatprep.mubr.msk.bf16.mxu0 %vm1739_vm0, %v1738_v1 }
   0x4   :  { %v26_v7 = vadd.f32 %v24_v5, %v1795_v3  ;;  %v27_v8 = vadd.f32 %v25_v6, %v1800_v4 }
   0x6   :  { %1496 = vmatpush3.bf16.msra.mxu1 %v1663_v2  ;;  %v28_v9 = vpack.c.bf16 %v27_v8, %v26_v7 }
   0x7   :  { %1501 = vmatprep.subr.bf16.mxu1 %v1738_v1 }
   0x9   :  { %1498 = vmatmul.mubr.msk.bf16.vlgmr.msra.gmra.mrb[0].mxu1 %vm50_vm1, %v28_v9 }
   0xa   :  { %1505 = vmatprep.mubr.msk.bf16.mxu1 %vm1739_vm0, %v1738_v1 }
   0xb   :  { %10 = vsyncpa [#allocation3], 0  ;;  %v1664_v10 = vld [vmem:[%s2077_s3] sm:$0xff]   ;;  %v1665_v11 = vld [vmem:[%s2077_s3 + $0x8] sm:$0xff]   ;;  %v95_v12 = vpack.c.bf16 %v1800_v4, %v1795_v3  ;;  %s1740_s9 = smov 96   ;;  %vm168_vm2 = vcmask 64512  }
   0xc   :  { %1502 = vmatpush3.bf16.msra.mxu1 %v1664_v10  ;;  %v1402_v13 = vld [vmem:[%s2078_s4] ss:$0 sm:$0xff]  ;;  %v1406_v26 = vld [vmem:[%s2078_s4 + $0x2] ss:$0 sm:$0xff]  ;;  %vm293_vm3 = vcmask 1043456   ;;  %s1741_s12 = smov 88  }
   0xd   :  { %1503 = vmatprep.subr.bf16.mxu1 %v1738_v1  ;;  %s1742_s13 = smov 120   ;;  %s1743_s14 = smov 80   ;;  %vm1077_vm4 = vcmask 130048   ;;  %vm1080_vm5 = vcmask 195584   ;;  %vm1297_vm6 = vcmask 523264  }
   0xe   :  { %s1744_s15 = smov 112   ;;  %s1745_s16 = smov 72  }
   0xf   :  { %s1746_s17 = smov 104   ;;  %s1747_s18 = smov 8  }
  0x10   :  { %1504 = vmatpush3.bf16.msra.mxu1 %v1665_v11  ;;  %s1748_s19 = smov 16   ;;  %s1749_s24 = smov 24  }
  0x11   :  { %1515 = vmatprep.subr.bf16.mxu1 %v1738_v1  ;;  %s1750_s23 = smov [#allocation2]  }
  0x13   :  { %1506 = vmatmul.mubr.msk.bf16.vlgmr.msra.gmra.mrb[4].mxu1 %vm50_vm1, %v95_v12 }
  0x14   :  { %1517 = vmatprep.mubr.msk.bf16.mxu1 %vm1739_vm0, %v1738_v1 }
  0xdc   :  { %v88_v14 = vpop.f32.mrb[0].mxu1 }
  0xdd   :  { %v89_v15 = vadd.f32 %v1402_v13, %v88_v14  ;;  %v1499_v16 = vpop.f32.mrb[1].mxu1 }
  0xde   :  { %v91_v17 = vpop.f32.mrb[2].mxu1 }
  0xdf   :  { %v1833_v18 = vpack.c.bf16 %v89_v15, %v89_v15  ;;  %v92_v19 = vadd.f32 %v1402_v13, %v91_v17  ;;  %v1500_v20 = vpop.f32.mrb[3].mxu1 }
  0xe1   :  { %166 = vrot.lane.b32.xlu0 %v1833_v18, %s1740_s9  ;;  %v1836_v21 = vpack.c.bf16 %v92_v19, %v92_v19 }
  0xe5   :  { %216 = vrot.lane.b32.xlu0 %v1836_v21, %s1740_s9 }
  0xe6   :  { %v154_v27 = vpop.f32.mrb[4].mxu1 }
  0xe7   :  { %v155_v28 = vadd.f32 %v1406_v26, %v154_v27  ;;  %v1507_v29 = vpop.f32.mrb[5].mxu1 }
  0xe8   :  { %v157_v30 = vpop.f32.mrb[6].mxu1 }
  0xe9   :  { %v158_v31 = vadd.f32 %v1406_v26, %v157_v30  ;;  %v1508_v32 = vpop.f32.mrb[7].mxu1  ;;  %v1854_v33 = vpack.c.bf16 %v155_v28, %v155_v28 }
  0xeb   :  { %v1856_v34 = vpack.c.bf16 %v158_v31, %v158_v31  ;;  %v295_v35 = vsel %vm293_vm3, %v1854_v33, 0 }
  0xed   :  { %v341_v36 = vsel %vm293_vm3, %v1856_v34, 0 }
 0x153   :  { %v167_v22 = vpop.permute.xlu0 %166 }
 0x154   :  { %v173_v23 = vsel %vm168_vm2, %v167_v22, 0 }
 0x155   :  { %1510 = vmatpush3.bf16.xpose.msra.mxu0 %v173_v23 }
 0x156   :  { %1521 = vmatprep.subr.bf16.mxu0 %v1738_v1 }
 0x157   :  { %v217_v24 = vpop.permute.xlu0 %216 }
 0x158   :  { %v222_v25 = vsel %vm168_vm2, %v217_v24, 0 }
 0x159   :  { %1516 = vmatpush3.bf16.xpose.msra.mxu1 %v222_v25 }
 0x15a   :  { %1527 = vmatprep.subr.bf16.mxu1 %v1738_v1 }
 0x15c   :  { %1512 = vmatmul.mubr.msk.bf16.vlgmr.msra.gmra.mrb[0].mxu0 %vm168_vm2, %v1833_v18 }
 0x15d   :  { %1523 = vmatprep.mubr.msk.bf16.mxu0 %vm1739_vm0, %v1738_v1  ;;  %1522 = vmatpush3.bf16.msra.mxu0 %v295_v35 }
 0x15e   :  { %1533 = vmatprep.subr.bf16.mxu0 %v1738_v1 }
 0x160   :  { %1518 = vmatmul.mubr.msk.bf16.vlgmr.msra.gmra.mrb[8].mxu1 %vm168_vm2, %v1836_v21 }
 0x161   :  { %1529 = vmatprep.mubr.msk.bf16.mxu1 %vm1739_vm0, %v1738_v1  ;;  %1528 = vmatpush3.bf16.msra.mxu1 %v341_v36 }
 0x162   :  { %1539 = vmatprep.subr.bf16.mxu1 %v1738_v1 }
 0x22f   :  { %v209_v37 = vpop.f32.mrb[0].mxu0 }
 0x230   :  { %v264_v38 = vmul.f32 0.35355338, %v209_v37  ;;  %v1513_v39 = vpop.f32.mrb[1].mxu0 }
 0x231   :  { %v212_v40 = vpop.f32.mrb[2].mxu0 }
 0x232   :  { %v1514_v41 = vpop.f32.mrb[3].mxu0  ;;  %v266_v42 = vsel %vm168_vm2, %v264_v38, -inf }
 0x233   :  { %267 = vmax.xlane.f32.xlu1 %v266_v42  ;;  %v258_v43 = vpop.f32.mrb[8].mxu1 }
 0x234   :  { %v265_v44 = vmul.f32 0.35355338, %v258_v43  ;;  %v1519_v45 = vpop.f32.mrb[9].mxu1 }
 0x235   :  { %v261_v46 = vpop.f32.mrb[10].mxu1 }
 0x236   :  { %v1520_v47 = vpop.f32.mrb[11].mxu1  ;;  %v269_v48 = vsel %vm168_vm2, %v265_v44, -inf }
 0x237   :  { %270 = vmax.xlane.f32.xlu1 %v269_v48 }
 0x248   :  { %385 = vrot.lane.b32.xlu1 %v1833_v18, %s1741_s12 }
 0x24c   :  { %435 = vrot.lane.b32.xlu1 %v1836_v21, %s1741_s12 }
 0x2c0   :  { %v268_v49 = vpop.xlane.xlu1 %267 }
 0x2c1   :  { %v272_v50 = vsub.f32 %v264_v38, %v268_v49 }
 0x2c3   :  { %v274_v51 = vmul.f32 1.442695, %v272_v50 }
 0x2c4   :  { %v271_v52 = vpop.xlane.xlu1 %270 }
 0x2c5   :  { %1674 = vpow2.f32 %v274_v51  ;;  %v273_v53 = vsub.f32 %v265_v44, %v271_v52 }
 0x2c7   :  { %v276_v54 = vmul.f32 1.442695, %v273_v53 }
 0x2c8   :  { %v386_v59 = vpop.permute.xlu1 %385 }
 0x2c9   :  { %1676 = vpow2.f32 %v276_v54  ;;  %v391_v6 = vsel %vm168_vm2, %v386_v59, 0 }
 0x2cc   :  { %v436_v60 = vpop.permute.xlu1 %435 }
 0x2cd   :  { %v441_v9 = vsel %vm168_vm2, %v436_v60, 0 }
 0x2cf   :  { %v1675_v55 = vpop.eup %1674 }
 0x2d0   :  { %v278_v56 = vsel %vm168_vm2, %v1675_v55, 0.0 }
 0x2d1   :  { %279 = vadd.xlane.f32.xlu0 %v278_v56 }
 0x2d3   :  { %v1677_v57 = vpop.eup %1676 }
 0x2d4   :  { %v281_v58 = vsel %vm168_vm2, %v1677_v57, 0.0 }
 0x2d5   :  { %282 = vadd.xlane.f32.xlu1 %v281_v58 }
 0x2e6   :  { %383 = vrot.lane.b32.xlu1 %v1833_v18, %s1742_s13 }
 0x2ea   :  { %433 = vrot.lane.b32.xlu1 %v1836_v21, %s1742_s13 }
 0x35e   :  { %v280_v61 = vpop.xlane.xlu0 %279 }
 0x35f   :  { %1678 = vrcp.f32 %v280_v61 }
 0x362   :  { %v283_v62 = vpop.xlane.xlu1 %282 }
 0x363   :  { %1680 = vrcp.f32 %v283_v62 }
 0x366   :  { %v384_v10 = vpop.permute.xlu1 %383 }
 0x369   :  { %v1679_v63 = vpop.eup %1678 }
 0x36a   :  { %v286_v0 = vmul.f32 %v1679_v63, %v1675_v55  ;;  %v434_v11 = vpop.permute.xlu1 %433 }
 0x36c   :  { %v288_v2 = vpack.c.bf16 %v286_v0, %v286_v0 }
 0x36d   :  { %v1681_v5 = vpop.eup %1680 }
 0x36e   :  { %v287_v7 = vmul.f32 %v1681_v5, %v1677_v57  ;;  %1524 = vmatmul.mubr.msk.bf16.vlgmr.msra.gmra.mrb[4].mxu0 %vm168_vm2, %v288_v2 }
 0x36f   :  { %1534 = vmatpush3.bf16.xpose.msra.mxu0 %v391_v6  ;;  %1535 = vmatprep.mubr.msk.bf16.mxu0 %vm1739_vm0, %v1738_v1 }
 0x370   :  { %v289_v8 = vpack.c.bf16 %v287_v7, %v287_v7  ;;  %1545 = vmatprep.subr.bf16.mxu0 %v1738_v1 }
 0x372   :  { %1530 = vmatmul.mubr.msk.bf16.vlgmr.msra.gmra.mrb[12].mxu1 %vm168_vm2, %v289_v8 }
 0x373   :  { %1540 = vmatpush3.bf16.xpose.msra.mxu1 %v441_v9  ;;  %1541 = vmatprep.mubr.msk.bf16.mxu1 %vm1739_vm0, %v1738_v1 }
 0x374   :  { %1551 = vmatprep.subr.bf16.mxu1 %v1738_v1 }
 0x376   :  { %1536 = vmatmul.mubr.msk.bf16.vlgmr.msra.gmra.mrb[8].mxu0 %vm168_vm2, %v384_v10 }
 0x377   :  { %1547 = vmatprep.mubr.msk.bf16.mxu0 %vm1739_vm0, %v1738_v1 }
 0x37a   :  { %1542 = vmatmul.mubr.msk.bf16.vlgmr.msra.gmra.mrb[16].mxu1 %vm168_vm2, %v434_v11 }
 0x37b   :  { %1553 = vmatprep.mubr.msk.bf16.mxu1 %vm1739_vm0, %v1738_v1 }
 0x441   :  { %v1890_v12 = vpop.f32.mrb[4].mxu0 }
 0x442   :  { %v1525_v13 = vpop.f32.mrb[5].mxu0 }
 0x443   :  { %v334_v14 = vpop.f32.mrb[6].mxu0 }
 0x444   :  { %v1526_v15 = vpop.f32.mrb[7].mxu0 }
 0x445   :  { %v1892_v16 = vpop.f32.mrb[12].mxu1 }
 0x446   :  { %v1531_v17 = vpop.f32.mrb[13].mxu1 }
 0x447   :  { %v380_v19 = vpop.f32.mrb[14].mxu1 }
 0x448   :  { %v1532_v20 = vpop.f32.mrb[15].mxu1 }
 0x449   :  { %v427_v22 = vpop.f32.mrb[8].mxu0 }
 0x44a   :  { %v483_v23 = vmul.f32 0.35355338, %v427_v22  ;;  %v1537_v24 = vpop.f32.mrb[9].mxu0 }
 0x44b   :  { %v430_v25 = vpop.f32.mrb[10].mxu0 }
 0x44c   :  { %v1538_v26 = vpop.f32.mrb[11].mxu0  ;;  %v485_v27 = vsel %vm168_vm2, %v483_v23, -inf }
 0x44d   :  { %486 = vmax.xlane.f32.xlu0 %v485_v27  ;;  %v477_v28 = vpop.f32.mrb[16].mxu1 }
 0x44e   :  { %v484_v29 = vmul.f32 0.35355338, %v477_v28  ;;  %v1543_v30 = vpop.f32.mrb[17].mxu1 }
 0x44f   :  { %v480_v31 = vpop.f32.mrb[18].mxu1 }
 0x450   :  { %v1544_v32 = vpop.f32.mrb[19].mxu1  ;;  %v488_v35 = vsel %vm168_vm2, %v484_v29, -inf }
 0x451   :  { %489 = vmax.xlane.f32.xlu1 %v488_v35 }
 0x462   :  { %659 = vrot.lane.b32.xlu1 %v1836_v21, %s1743_s14 }
 0x463   :  { %510 = vrot.lane.b32.xlu0 %v1854_v33, %s1742_s13 }
 0x467   :  { %559 = vrot.lane.b32.xlu0 %v1856_v34, %s1742_s13 }
 0x4da   :  { %v487_v36 = vpop.xlane.xlu0 %486 }
 0x4db   :  { %v491_v37 = vsub.f32 %v483_v23, %v487_v36 }
 0x4dd   :  { %v493_v38 = vmul.f32 1.442695, %v491_v37 }
 0x4de   :  { %v511_v39 = vpop.permute.xlu0 %510  ;;  %v490_v40 = vpop.xlane.xlu1 %489 }
 0x4df   :  { %1682 = vpow2.f32 %v493_v38  ;;  %v516_v41 = vsel %vm293_vm3, %v511_v39, 0  ;;  %v492_v42 = vsub.f32 %v484_v29, %v490_v40 }
 0x4e0   :  { %1546 = vmatpush3.bf16.msra.mxu0 %v516_v41 }
 0x4e1   :  { %v495_v43 = vmul.f32 1.442695, %v492_v42  ;;  %1557 = vmatprep.subr.bf16.mxu0 %v1738_v1 }
 0x4e2   :  { %v560_v44 = vpop.permute.xlu0 %559  ;;  %v660_v59 = vpop.permute.xlu1 %659 }
 0x4e3   :  { %1684 = vpow2.f32 %v495_v43  ;;  %v565_v45 = vsel %vm293_vm3, %v560_v44, 0  ;;  %v665_v61 = vsel %vm168_vm2, %v660_v59, 0 }
 0x4e4   :  { %1552 = vmatpush3.bf16.msra.mxu1 %v565_v45 }
 0x4e5   :  { %1563 = vmatprep.subr.bf16.mxu1 %v1738_v1 }
 0x4e9   :  { %v1683_v46 = vpop.eup %1682 }
 0x4ea   :  { %v497_v47 = vsel %vm168_vm2, %v1683_v46, 0.0 }
 0x4eb   :  { %498 = vadd.xlane.f32.xlu0 %v497_v47 }
 0x4ed   :  { %v1685_v48 = vpop.eup %1684 }
 0x4ee   :  { %v500_v49 = vsel %vm168_vm2, %v1685_v48, 0.0 }
 0x4ef   :  { %501 = vadd.xlane.f32.xlu0 %v500_v49 }
 0x505   :  { %609 = vrot.lane.b32.xlu0 %v1833_v18, %s1743_s14 }
 0x509   :  { %607 = vrot.lane.b32.xlu0 %v1833_v18, %s1744_s15 }
 0x50d   :  { %657 = vrot.lane.b32.xlu0 %v1836_v21, %s1744_s15 }
 0x578   :  { %v499_v50 = vpop.xlane.xlu0 %498 }
 0x579   :  { %1686 = vrcp.f32 %v499_v50 }
 0x57c   :  { %v502_v51 = vpop.xlane.xlu0 %501 }
 0x57d   :  { %1688 = vrcp.f32 %v502_v51 }
 0x580   :  { %v610_v54 = vpop.permute.xlu0 %609 }
 0x581   :  { %v615_v58 = vsel %vm168_vm2, %v610_v54, 0 }
 0x583   :  { %v1687_v52 = vpop.eup %1686 }
 0x584   :  { %v505_v53 = vmul.f32 %v1687_v52, %v1683_v46  ;;  %v608_v62 = vpop.permute.xlu0 %607 }
 0x586   :  { %v507_v55 = vpack.c.bf16 %v505_v53, %v505_v53 }
 0x587   :  { %v1689_v56 = vpop.eup %1688 }
 0x588   :  { %v506_v57 = vmul.f32 %v1689_v56, %v1685_v48  ;;  %1548 = vmatmul.mubr.msk.bf16.vlgmr.msra.gmra.mrb[12].mxu0 %vm168_vm2, %v507_v55  ;;  %v658_v63 = vpop.permute.xlu0 %657 }
 0x589   :  { %1558 = vmatpush3.bf16.xpose.msra.mxu0 %v615_v58  ;;  %1559 = vmatprep.mubr.msk.bf16.mxu0 %vm1739_vm0, %v1738_v1 }
 0x58a   :  { %v508_v60 = vpack.c.bf16 %v506_v57, %v506_v57  ;;  %1569 = vmatprep.subr.bf16.mxu0 %v1738_v1 }
 0x58c   :  { %1554 = vmatmul.mubr.msk.bf16.vlgmr.msra.gmra.mrb[20].mxu1 %vm168_vm2, %v508_v60 }
 0x58d   :  { %1564 = vmatpush3.bf16.xpose.msra.mxu1 %v665_v61  ;;  %1565 = vmatprep.mubr.msk.bf16.mxu1 %vm1739_vm0, %v1738_v1 }
 0x58e   :  { %1575 = vmatprep.subr.bf16.mxu1 %v1738_v1 }
 0x590   :  { %1560 = vmatmul.mubr.msk.bf16.vlgmr.msra.gmra.mrb[16].mxu0 %vm168_vm2, %v608_v62 }
 0x591   :  { %1571 = vmatprep.mubr.msk.bf16.mxu0 %vm1739_vm0, %v1738_v1 }
 0x594   :  { %1566 = vmatmul.mubr.msk.bf16.vlgmr.msra.gmra.mrb[24].mxu1 %vm168_vm2, %v658_v63 }
 0x595   :  { %1577 = vmatprep.mubr.msk.bf16.mxu1 %vm1739_vm0, %v1738_v1 }
 0x65b   :  { %v1928_v0 = vpop.f32.mrb[12].mxu0 }
 0x65c   :  { %v1549_v2 = vpop.f32.mrb[13].mxu0 }
 0x65d   :  { %v555_v5 = vpop.f32.mrb[14].mxu0 }
 0x65e   :  { %v1550_v6 = vpop.f32.mrb[15].mxu0 }
 0x65f   :  { %v1930_v7 = vpop.f32.mrb[20].mxu1 }
 0x660   :  { %v1647_v8 = vpack.i.bf16 %v1930_v7, %v1928_v0  ;;  %v1555_v9 = vpop.f32.mrb[21].mxu1 }
 0x661   :  { %v604_v10 = vpop.f32.mrb[22].mxu1 }
 0x662   :  { %v1556_v11 = vpop.f32.mrb[23].mxu1 }
 0x663   :  { %v651_v13 = vpop.f32.mrb[16].mxu0 }
 0x664   :  { %v707_v14 = vmul.f32 0.35355338, %v651_v13  ;;  %v1561_v15 = vpop.f32.mrb[17].mxu0 }
 0x665   :  { %v654_v17 = vpop.f32.mrb[18].mxu0 }
 0x666   :  { %v1562_v19 = vpop.f32.mrb[19].mxu0  ;;  %v709_v20 = vsel %vm168_vm2, %v707_v14, -inf }
 0x667   :  { %710 = vmax.xlane.f32.xlu0 %v709_v20  ;;  %v701_v22 = vpop.f32.mrb[24].mxu1 }
 0x668   :  { %v708_v23 = vmul.f32 0.35355338, %v701_v22  ;;  %v1567_v24 = vpop.f32.mrb[25].mxu1 }
 0x669   :  { %v704_v25 = vpop.f32.mrb[26].mxu1 }
 0x66a   :  { %v1568_v26 = vpop.f32.mrb[27].mxu1  ;;  %v712_v27 = vsel %vm168_vm2, %v708_v23, -inf }
 0x66b   :  { %713 = vmax.xlane.f32.xlu1 %v712_v27 }
 0x67c   :  { %781 = vrot.lane.b32.xlu1 %v1856_v34, %s1744_s15 }
 0x67d   :  { %733 = vrot.lane.b32.xlu0 %v1854_v33, %s1744_s15 }
 0x680   :  { %831 = vrot.lane.b32.xlu1 %v1833_v18, %s1745_s16 }
 0x684   :  { %829 = vrot.lane.b32.xlu1 %v1833_v18, %s1746_s17 }
 0x6f4   :  { %v711_v28 = vpop.xlane.xlu0 %710 }
 0x6f5   :  { %v715_v29 = vsub.f32 %v707_v14, %v711_v28 }
 0x6f7   :  { %v717_v30 = vmul.f32 1.442695, %v715_v29 }
 0x6f8   :  { %v734_v31 = vpop.permute.xlu0 %733  ;;  %v714_v32 = vpop.xlane.xlu1 %713 }
 0x6f9   :  { %1690 = vpow2.f32 %v717_v30  ;;  %v739_v35 = vsel %vm293_vm3, %v734_v31, 0  ;;  %v716_v36 = vsub.f32 %v708_v23, %v714_v32 }
 0x6fa   :  { %1570 = vmatpush3.bf16.msra.mxu0 %v739_v35 }
 0x6fb   :  { %v719_v37 = vmul.f32 1.442695, %v716_v36  ;;  %1581 = vmatprep.subr.bf16.mxu0 %v1738_v1 }
 0x6fc   :  { %v782_v38 = vpop.permute.xlu1 %781 }
 0x6fd   :  { %1692 = vpow2.f32 %v719_v37  ;;  %v787_v39 = vsel %vm293_vm3, %v782_v38, 0 }
 0x6fe   :  { %1576 = vmatpush3.bf16.msra.mxu1 %v787_v39 }
 0x6ff   :  { %1587 = vmatprep.subr.bf16.mxu1 %v1738_v1 }
 0x700   :  { %v832_v47 = vpop.permute.xlu1 %831 }
 0x701   :  { %v837_v50 = vsel %vm168_vm2, %v832_v47, 0 }
 0x703   :  { %v1691_v18 = vpop.eup %1690 }
 0x704   :  { %v721_v40 = vsel %vm168_vm2, %v1691_v18, 0.0  ;;  %v830_v54 = vpop.permute.xlu1 %829 }
 0x705   :  { %722 = vadd.xlane.f32.xlu0 %v721_v40 }
 0x707   :  { %v1693_v41 = vpop.eup %1692 }
 0x708   :  { %v724_v42 = vsel %vm168_vm2, %v1693_v41, 0.0 }
 0x709   :  { %725 = vadd.xlane.f32.xlu0 %v724_v42  ;;  %v1667_v42 = vld [vmem:[%s2077_s3 + $0x18] sm:$0xff]  }
 0x71f   :  { %881 = vrot.lane.b32.xlu0 %v1836_v21, %s1745_s16 }
 0x723   :  { %879 = vrot.lane.b32.xlu0 %v1836_v21, %s1746_s17 }
 0x792   :  { %v723_v43 = vpop.xlane.xlu0 %722 }
 0x793   :  { %1694 = vrcp.f32 %v723_v43 }
 0x796   :  { %v726_v44 = vpop.xlane.xlu0 %725 }
 0x797   :  { %1696 = vrcp.f32 %v726_v44 }
 0x79a   :  { %v882_v52 = vpop.permute.xlu0 %881 }
 0x79b   :  { %v887_v53 = vsel %vm168_vm2, %v882_v52, 0 }
 0x79d   :  { %v1695_v45 = vpop.eup %1694 }
 0x79e   :  { %v729_v46 = vmul.f32 %v1695_v45, %v1691_v18  ;;  %v880_v55 = vpop.permute.xlu0 %879 }
 0x7a0   :  { %v731_v48 = vpack.c.bf16 %v729_v46, %v729_v46 }
 0x7a1   :  { %v1697_v49 = vpop.eup %1696 }
 0x7a2   :  { %v730_v51 = vmul.f32 %v1697_v49, %v1693_v41  ;;  %1572 = vmatmul.mubr.msk.bf16.vlgmr.msra.gmra.mrb[20].mxu0 %vm168_vm2, %v731_v48  ;;  %v1666_v41 = vld [vmem:[%s2077_s3 + $0x10] sm:$0xff]  }
 0x7a3   :  { %1582 = vmatpush3.bf16.xpose.msra.mxu0 %v837_v50  ;;  %1583 = vmatprep.mubr.msk.bf16.mxu0 %vm1739_vm0, %v1738_v1 }
 0x7a4   :  { %v732_v21 = vpack.c.bf16 %v730_v51, %v730_v51  ;;  %1593 = vmatprep.subr.bf16.mxu0 %v1738_v1 }
 0x7a6   :  { %1578 = vmatmul.mubr.msk.bf16.vlgmr.msra.gmra.mrb[28].mxu1 %vm168_vm2, %v732_v21 }
 0x7a7   :  { %1588 = vmatpush3.bf16.xpose.msra.mxu1 %v887_v53  ;;  %1589 = vmatprep.mubr.msk.bf16.mxu1 %vm1739_vm0, %v1738_v1 }
 0x7a8   :  { %1599 = vmatprep.subr.bf16.mxu1 %v1738_v1 }
 0x7aa   :  { %1584 = vmatmul.mubr.msk.bf16.vlgmr.msra.gmra.mrb[24].mxu0 %vm168_vm2, %v830_v54 }
 0x7ab   :  { %1595 = vmatprep.mubr.msk.bf16.mxu0 %vm1739_vm0, %v1738_v1 }
 0x7ae   :  { %1590 = vmatmul.mubr.msk.bf16.vlgmr.msra.gmra.mrb[32].mxu1 %vm168_vm2, %v880_v55 }
 0x7af   :  { %1601 = vmatprep.mubr.msk.bf16.mxu1 %vm1739_vm0, %v1738_v1 }
 0x875   :  { %v775_v56 = vpop.f32.mrb[20].mxu0 }
 0x876   :  { %v1573_v57 = vpop.f32.mrb[21].mxu0 }
 0x877   :  { %v778_v58 = vpop.f32.mrb[22].mxu0 }
 0x878   :  { %v1574_v59 = vpop.f32.mrb[23].mxu0 }
 0x879   :  { %v823_v60 = vpop.f32.mrb[28].mxu1 }
 0x87a   :  { %v1652_v61 = vpack.i.bf16 %v823_v60, %v775_v56  ;;  %v1579_v62 = vpop.f32.mrb[29].mxu1 }
 0x87b   :  { %v826_v63 = vpop.f32.mrb[30].mxu1 }
 0x87c   :  { %v1580_v2 = vpop.f32.mrb[31].mxu1 }
 0x87d   :  { %v873_v5 = vpop.f32.mrb[24].mxu0 }
 0x87e   :  { %v929_v6 = vmul.f32 0.35355338, %v873_v5  ;;  %v1585_v9 = vpop.f32.mrb[25].mxu0 }
 0x87f   :  { %v876_v10 = vpop.f32.mrb[26].mxu0 }
 0x880   :  { %v1586_v11 = vpop.f32.mrb[27].mxu0  ;;  %v931_v13 = vsel %vm168_vm2, %v929_v6, -inf }
 0x881   :  { %932 = vmax.xlane.f32.xlu1 %v931_v13  ;;  %v923_v14 = vpop.f32.mrb[32].mxu1 }
 0x882   :  { %v930_v15 = vmul.f32 0.35355338, %v923_v14  ;;  %v1591_v17 = vpop.f32.mrb[33].mxu1 }
 0x883   :  { %v926_v19 = vpop.f32.mrb[34].mxu1 }
 0x884   :  { %v1592_v20 = vpop.f32.mrb[35].mxu1  ;;  %v934_v22 = vsel %vm168_vm2, %v930_v15, -inf }
 0x885   :  { %935 = vmax.xlane.f32.xlu0 %v934_v22 }
 0x90e   :  { %v933_v23 = vpop.xlane.xlu1 %932 }
 0x90f   :  { %v937_v24 = vsub.f32 %v929_v6, %v933_v23 }
 0x911   :  { %v939_v25 = vmul.f32 1.442695, %v937_v24 }
 0x912   :  { %v936_v26 = vpop.xlane.xlu0 %935 }
 0x913   :  { %1698 = vpow2.f32 %v939_v25  ;;  %v938_v27 = vsub.f32 %v930_v15, %v936_v26 }
 0x915   :  { %v941_v28 = vmul.f32 1.442695, %v938_v27 }
 0x917   :  { %1700 = vpow2.f32 %v941_v28 }
 0x91d   :  { %v1699_v29 = vpop.eup %1698 }
 0x91e   :  { %v943_v30 = vsel %vm168_vm2, %v1699_v29, 0.0 }
 0x91f   :  { %944 = vadd.xlane.f32.xlu0 %v943_v30 }
 0x921   :  { %v1701_v31 = vpop.eup %1700 }
 0x922   :  { %v946_v32 = vsel %vm168_vm2, %v1701_v31, 0.0 }
 0x923   :  { %947 = vadd.xlane.f32.xlu1 %v946_v32  ;;  %v1670_v32 = vld [vmem:[%s2077_s3 + $0x20] sm:$0xff]  }
 0x934   :  { %1003 = vrot.lane.b32.xlu1 %v1856_v34, %s1746_s17 }
 0x935   :  { %955 = vrot.lane.b32.xlu0 %v1854_v33, %s1746_s17 }
 0x938   :  { %1648 = vrot.lane.b32.xlu1 %v1647_v8, %s1747_s18 }
 0x939   :  { %1653 = vrot.lane.b32.xlu0 %v1652_v61, %s1748_s19 }
 0x9ac   :  { %v945_v35 = vpop.xlane.xlu0 %944 }
 0x9ad   :  { %1702 = vrcp.f32 %v945_v35  ;;  %v1671_v35 = vld [vmem:[%s2077_s3 + $0x28] sm:$0xff]  }
 0x9b0   :  { %v948_v36 = vpop.xlane.xlu1 %947  ;;  %v956_v37 = vpop.permute.xlu0 %955 }
 0x9b1   :  { %1704 = vrcp.f32 %v948_v36  ;;  %v961_v38 = vsel %vm293_vm3, %v956_v37, 0 }
 0x9b2   :  { %1594 = vmatpush3.bf16.msra.mxu0 %v961_v38 }
 0x9b3   :  { %1605 = vmatprep.subr.bf16.mxu0 %v1738_v1 }
 0x9b4   :  { %v1004_v34 = vpop.permute.xlu1 %1003  ;;  %v1654_v54 = vpop.permute.xlu0 %1653 }
 0x9b5   :  { %v1009_v33 = vsel %vm293_vm3, %v1004_v34, 0  ;;  %v1656_v57 = vunpack.i.h.bf16 %v1654_v54  ;;  %v1655_v58 = vunpack.i.l.bf16 %v1654_v54 }
 0x9b6   :  { %1600 = vmatpush3.bf16.msra.mxu1 %v1009_v33 }
 0x9b7   :  { %v1703_v39 = vpop.eup %1702  ;;  %1613 = vmatprep.subr.bf16.mxu1 %v1738_v1 }
 0x9b8   :  { %v951_v0 = vmul.f32 %v1703_v39, %v1699_v29  ;;  %v1649_v52 = vpop.permute.xlu1 %1648 }
 0x9b9   :  { %v1651_v21 = vunpack.i.h.bf16 %v1649_v52  ;;  %v1650_v53 = vunpack.i.l.bf16 %v1649_v52 }
 0x9ba   :  { %v953_v7 = vpack.c.bf16 %v951_v0, %v951_v0 }
 0x9bb   :  { %v1705_v8 = vpop.eup %1704  ;;  %v1076_v55 = vsel %vm168_vm2, %v1892_v16, %v1651_v21  ;;  %v1075_v56 = vsel %vm168_vm2, %v1890_v12, %v1650_v53  ;;  %v1426_v12 = vld [vmem:[%s2078_s4 + $0x3] ss:$0 sm:$0xff] }
 0x9bc   :  { %v952_v18 = vmul.f32 %v1705_v8, %v1701_v31  ;;  %1596 = vmatmul.mubr.msk.bf16.vlgmr.msra.gmra.mrb[28].mxu0 %vm168_vm2, %v953_v7  ;;  %v1078_v62 = vsel %vm1077_vm4, %v1075_v56, %v1655_v58  ;;  %v1079_v63 = vsel %vm1077_vm4, %v1076_v55, %v1656_v57  ;;  %v1669_v31 = vld [vmem:[%s2076_s2 + $0x18] sm:$0xff]   ;;  %v1430_v8 = vld [vmem:[%s2078_s4 + $0x5] ss:$0 sm:$0xff] }
 0x9bd   :  { %1609 = vmatprep.mubr.msk.bf16.mxu0 %vm1739_vm0, %v1738_v1  ;;  %1606 = vmatpush3.bf16.msra.mxu0 %v1666_v41 }
 0x9be   :  { %v954_v40 = vpack.c.bf16 %v952_v18, %v952_v18  ;;  %1607 = vmatprep.subr.bf16.mxu0 %v1738_v1 }
 0x9c0   :  { %1602 = vmatmul.mubr.msk.bf16.vlgmr.msra.gmra.mrb[36].mxu1 %vm168_vm2, %v954_v40 }
 0x9c1   :  { %1617 = vmatprep.mubr.msk.bf16.mxu1 %vm1739_vm0, %v1738_v1  ;;  %1608 = vmatpush3.bf16.msra.mxu0 %v1667_v42  ;;  %v1431_v42 = vld [vmem:[%s2078_s4 + $0x6] ss:$0 sm:$0xff] }
 0x9c2   :  { %1621 = vmatprep.subr.bf16.mxu0 %v1738_v1 }
 0xa8f   :  { %v997_v43 = vpop.f32.mrb[28].mxu0 }
 0xa90   :  { %v1597_v44 = vpop.f32.mrb[29].mxu0 }
 0xa91   :  { %v1000_v45 = vpop.f32.mrb[30].mxu0 }
 0xa92   :  { %v1598_v46 = vpop.f32.mrb[31].mxu0 }
 0xa93   :  { %v1045_v47 = vpop.f32.mrb[36].mxu1 }
 0xa94   :  { %v1657_v48 = vpack.i.bf16 %v1045_v47, %v997_v43  ;;  %v1603_v49 = vpop.f32.mrb[37].mxu1  ;;  %v1672_v47 = vld [vmem:[%s2077_s3 + $0x30] sm:$0xff]  }
 0xa95   :  { %v1048_v50 = vpop.f32.mrb[38].mxu1  ;;  %v1432_v49 = vld [vmem:[%s2078_s4 + $0x1] ss:$0 sm:$0xff] }
 0xa96   :  { %1658 = vrot.lane.b32.xlu1 %v1657_v48, %s1749_s24  ;;  %v1604_v51 = vpop.f32.mrb[39].mxu1  ;;  %v1673_v48 = vld [vmem:[%s2077_s3 + $0x38] sm:$0xff]   ;;  %s1391_s24 = sshll.u32 %s1750_s23, 4  ;;  %s1392_s24 = int_to_ptr.vmem [resolvable:$true] %s1391_s24 }
 0xa97   :  { %s1714_s25 = scalar_lea.vmem %s1392_s24, 256  ;;  %p1719_p1 = scmp.lt.s32.totalorder %s1392_s24, %s1392_s24 }
 0xa98   :  { %p1715_p0 = scmp.ne.s32.totalorder %s1392_s24, %s1714_s25  ;;  %p1720_p2 = scmp.lt.s32.totalorder %s1714_s25, %s1714_s25 }
 0xa9a   :  { %p1721_p3 = por %p1720_p2, %p1719_p1 }
 0xa9c   :  { %p1722_p4 = pnand %p1721_p3, %p1715_p0 }
 0xb08   :  { %v1659_v59 = vpop.permute.xlu1 %1658 }
 0xb09   :  { %v1661_v60 = vunpack.i.h.bf16 %v1659_v59  ;;  %v1660_v61 = vunpack.i.l.bf16 %v1659_v59 }
 0xb0b   :  { %v1082_v2 = vsel %vm1080_vm5, %v1079_v63, %v1661_v60  ;;  %v1081_v5 = vsel %vm1080_vm5, %v1078_v62, %v1660_v61 }
 0xb0c   :  { %v1083_v6 = vpack.c.bf16 %v1082_v2, %v1081_v5 }
 0xb0e   :  { %1610 = vmatmul.mubr.msk.bf16.vlgmr.msra.gmra.mrb[32].mxu0 %vm50_vm1, %v1083_v6 }
 0xb0f   :  { %1629 = vmatprep.mubr.msk.bf16.mxu0 %vm1739_vm0, %v1738_v1  ;;  %1622 = vmatpush3.bf16.msra.mxu0 %v1670_v32 }
 0xb10   :  { %1623 = vmatprep.subr.bf16.mxu0 %v1738_v1 }
 0xb13   :  { %1624 = vmatpush3.bf16.msra.mxu0 %v1671_v35 }
 0xb14   :  { %1625 = vmatprep.subr.bf16.mxu0 %v1738_v1 }
 0xb17   :  { %1626 = vmatpush3.bf16.msra.mxu0 %v1672_v47 }
 0xb18   :  { %1627 = vmatprep.subr.bf16.mxu0 %v1738_v1 }
 0xb1b   :  { %1628 = vmatpush3.bf16.msra.mxu0 %v1673_v48 }
 0xbe1   :  { %v1142_v16 = vpop.f32.mrb[32].mxu0 }
 0xbe2   :  { %v1143_v9 = vadd.f32 %v1426_v12, %v1142_v16  ;;  %v1611_v10 = vpop.f32.mrb[33].mxu0 }
 0xbe3   :  { %v1145_v11 = vpop.f32.mrb[34].mxu0 }
 0xbe4   :  { %v1146_v13 = vadd.f32 %v1426_v12, %v1145_v11  ;;  %v1612_v14 = vpop.f32.mrb[35].mxu0  ;;  %v1149_v15 = vadd.f32 %v1143_v9, %v1795_v3 }
 0xbe6   :  { %v1153_v17 = vsel %vm50_vm1, %v1149_v15, 0.0  ;;  %v1150_v19 = vadd.f32 %v1146_v13, %v1800_v4  ;;  %v1668_v4 = vld [vmem:[%s2076_s2 + $0x10] sm:$0xff]  }
 0xbe7   :  { %1154 = vadd.xlane.f32.xlu0 %v1153_v17  ;;  %1614 = vmatpush3.bf16.msra.mxu1 %v1668_v4  ;;  %v1443_v4 = vld [vmem:[%s2078_s4 + $0x8] ss:$0 sm:$0xff] }
 0xbe8   :  { %v1156_v20 = vsel %vm50_vm1, %v1150_v19, 0.0  ;;  %1615 = vmatprep.subr.bf16.mxu1 %v1738_v1  ;;  %v1436_v1 = vld [vmem:[%s2078_s4 + $0x4] ss:$0 sm:$0xff] }
 0xbe9   :  { %1157 = vadd.xlane.f32.xlu1 %v1156_v20 }
 0xbeb   :  { %1616 = vmatpush3.bf16.msra.mxu1 %v1669_v31 }
 0xc74   :  { %v1155_v22 = vpop.xlane.xlu0 %1154 }
 0xc75   :  { %v1159_v23 = vmul.f32 0.03125, %v1155_v22 }
 0xc76   :  { %v1158_v24 = vpop.xlane.xlu1 %1157 }
 0xc77   :  { %v1161_v25 = vsub.f32 %v1149_v15, %v1159_v23  ;;  %v1160_v26 = vmul.f32 0.03125, %v1158_v24 }
 0xc79   :  { %v1162_v27 = vsub.f32 %v1150_v19, %v1160_v26  ;;  %v1163_v28 = vmul.f32 %v1161_v25, %v1161_v25 }
 0xc7b   :  { %v1165_v29 = vsel %vm50_vm1, %v1163_v28, 0.0  ;;  %v1164_v30 = vmul.f32 %v1162_v27, %v1162_v27 }
 0xc7c   :  { %1166 = vadd.xlane.f32.xlu0 %v1165_v29  ;;  %v1442_v29 = vld [vmem:[%s2078_s4 + $0x7] ss:$0 sm:$0xff] }
 0xc7d   :  { %v1168_v3 = vsel %vm50_vm1, %v1164_v30, 0.0 }
 0xc80   :  { %1169 = vadd.xlane.f32.xlu0 %v1168_v3 }
 0xd09   :  { %v1167_v36 = vpop.xlane.xlu0 %1166 }
 0xd0a   :  { %v1171_v37 = vmul.f32 0.03125, %v1167_v36 }
 0xd0c   :  { %v1173_v38 = vadd.f32 1e-05, %v1171_v37 }
 0xd0d   :  { %v1170_v34 = vpop.xlane.xlu0 %1169 }
 0xd0e   :  { %1706 = vrsqrt.f32 %v1173_v38  ;;  %v1172_v33 = vmul.f32 0.03125, %v1170_v34 }
 0xd10   :  { %v1174_v39 = vadd.f32 1e-05, %v1172_v33 }
 0xd12   :  { %1708 = vrsqrt.f32 %v1174_v39 }
 0xd18   :  { %v1707_v0 = vpop.eup %1706 }
 0xd19   :  { %v1177_v7 = vmul.f32 %v1707_v0, %v1161_v25 }
 0xd1b   :  { %v1183_v40 = vmul.f32 %v1430_v8, %v1177_v7 }
 0xd1c   :  { %v1709_v18 = vpop.eup %1708 }
 0xd1d   :  { %v1178_v41 = vmul.f32 %v1709_v18, %v1162_v27  ;;  %v1189_v44 = vadd.f32 %v1431_v42, %v1183_v40 }
 0xd1f   :  { %v1184_v43 = vmul.f32 %v1430_v8, %v1178_v41 }
 0xd21   :  { %v1190_v45 = vadd.f32 %v1431_v42, %v1184_v43 }
 0xd23   :  { %v1191_v46 = vpack.c.bf16 %v1190_v45, %v1189_v44 }
 0xd25   :  { %1618 = vmatmul.mubr.msk.bf16.vlgmr.msra.gmra.mrb[40].mxu1 %vm50_vm1, %v1191_v46 }
 0xdf8   :  { %v1250_v50 = vpop.f32.mrb[40].mxu1 }
 0xdf9   :  { %v1251_v51 = vadd.f32 %v1432_v49, %v1250_v50  ;;  %v1619_v52 = vpop.f32.mrb[41].mxu1 }
 0xdfa   :  { %v1253_v21 = vpop.f32.mrb[42].mxu1 }
 0xdfb   :  { %v1254_v53 = vadd.f32 %v1432_v49, %v1253_v21  ;;  %v1620_v54 = vpop.f32.mrb[43].mxu1  ;;  %v1257_v55 = vmax.f32 %v1251_v51, 0.0 }
 0xdfd   :  { %v1258_v56 = vmax.f32 %v1254_v53, 0.0 }
 0xdff   :  { %v1259_v57 = vpack.c.bf16 %v1258_v56, %v1257_v55 }
 0xe01   :  { %1630 = vmatmul.mubr.msk.bf16.vlgmr.msra.gmra.mrb[36].mxu0 %vm1297_vm6, %v1259_v57 }
 0xed4   :  { %v1335_v58 = vpop.f32.mrb[36].mxu0 }
 0xed5   :  { %v1336_v59 = vadd.f32 %v1436_v1, %v1335_v58  ;;  %v1631_v60 = vpop.f32.mrb[37].mxu0 }
 0xed6   :  { %v1338_v61 = vpop.f32.mrb[38].mxu0 }
 0xed7   :  { %v1339_v62 = vadd.f32 %v1436_v1, %v1338_v61  ;;  %v1632_v63 = vpop.f32.mrb[39].mxu0  ;;  %v1342_v2 = vadd.f32 %v1336_v59, %v1189_v44 }
 0xed9   :  { %v1346_v5 = vsel %vm50_vm1, %v1342_v2, 0.0  ;;  %v1343_v6 = vadd.f32 %v1339_v62, %v1190_v45 }
 0xeda   :  { %1347 = vadd.xlane.f32.xlu1 %v1346_v5 }
 0xedb   :  { %v1349_v12 = vsel %vm50_vm1, %v1343_v6, 0.0 }
 0xedc   :  { %1350 = vadd.xlane.f32.xlu0 %v1349_v12 }
 0xf67   :  { %v1348_v16 = vpop.xlane.xlu1 %1347 }
 0xf68   :  { %v1352_v9 = vmul.f32 0.03125, %v1348_v16 }
 0xf69   :  { %v1351_v10 = vpop.xlane.xlu0 %1350 }
 0xf6a   :  { %v1354_v11 = vsub.f32 %v1342_v2, %v1352_v9  ;;  %v1353_v13 = vmul.f32 0.03125, %v1351_v10 }
 0xf6c   :  { %v1355_v14 = vsub.f32 %v1343_v6, %v1353_v13  ;;  %v1356_v15 = vmul.f32 %v1354_v11, %v1354_v11 }
 0xf6e   :  { %v1358_v17 = vsel %vm50_vm1, %v1356_v15, 0.0  ;;  %v1357_v19 = vmul.f32 %v1355_v14, %v1355_v14 }
 0xf6f   :  { %1359 = vadd.xlane.f32.xlu1 %v1358_v17 }
 0xf70   :  { %v1361_v20 = vsel %vm50_vm1, %v1357_v19, 0.0 }
 0xf71   :  { %1362 = vadd.xlane.f32.xlu0 %v1361_v20 }
 0xffc   :  { %v1360_v22 = vpop.xlane.xlu1 %1359 }
 0xffd   :  { %v1364_v23 = vmul.f32 0.03125, %v1360_v22 }
 0xffe   :  { %v1363_v24 = vpop.xlane.xlu0 %1362 }
 0xfff   :  { %v1366_v25 = vadd.f32 1e-05, %v1364_v23  ;;  %v1365_v26 = vmul.f32 0.03125, %v1363_v24 }
0x1001   :  { %1710 = vrsqrt.f32 %v1366_v25  ;;  %v1367_v27 = vadd.f32 1e-05, %v1365_v26 }
0x1003   :  { %1712 = vrsqrt.f32 %v1367_v27 }
0x100b   :  { %v1711_v28 = vpop.eup %1710 }
0x100c   :  { %v1370_v30 = vmul.f32 %v1711_v28, %v1354_v11 }
0x100d   :  { %v1713_v3 = vpop.eup %1712 }
0x100e   :  { %v1371_v31 = vmul.f32 %v1713_v3, %v1355_v14  ;;  %v1376_v32 = vmul.f32 %v1442_v29, %v1370_v30 }
0x1010   :  { %v1377_v35 = vmul.f32 %v1442_v29, %v1371_v31  ;;  %v1382_v36 = vadd.f32 %v1443_v4, %v1376_v32 }
0x1012   :  { %v1383_v37 = vadd.f32 %v1443_v4, %v1377_v35  ;;  %1384 = vst.msk [vmem:[#allocation2] sm:$0xff] %vm50_vm1, %v1382_v36 }
0x1014   :  { %1385 = vst.msk [vmem:[#allocation2 + $0x8] sm:$0xff] %vm50_vm1, %v1383_v37 }
0x1015   :  { %1725 = shalt.err (!%p1722_p4)
}
0x1016   :  { %s1726_s27 = scalar_lea.hbm %s2079_s5, 256 }
0x1017   :  { %p1727_p5 = scmp.ne.s32.totalorder %s2079_s5, %s1726_s27  ;;  %p1730_p6 = scmp.lt.u32.totalorder %s1726_s27, %s2079_s5 }
0x1019   :  { %p1732_p7 = pnand %p1730_p6, %p1727_p5 }
0x101b   :  { %1735 = shalt.err (!%p1732_p7)
}
0x101c   :  { %s1751_s30 = smov 128  }
0x101d   :  { %1397 = dma.vmem_to_hbm [thread:$0]  %s1392_s24, 256, %s2079_s5, [#allocation3], %s1751_s30, %s1751_s30, %s1747_s18  }
0x101e   :  { %1736 = dma.done.wait [#allocation3], 256  }
0x101f   :  { %1737 = vsyncadd [#allocation3], 4294967040 }
0x1020   :  { %1401 = vsyncpa [#allocation3], 1 }

</bundles_post_ra>
